<compile_context>
chip_gen: v6e
topology: v6e:2x2x1
jax: 0.10.0
libtpu: 0.0.40
codegen_flags: <defaults>
</compile_context>

<pallas_src>
import jax
import jax.numpy as jnp
from jax.experimental import pallas as pl
from jax.experimental.pallas import tpu as pltpu


def _passthrough_kernel(x_ref, o_ref):
    """Single full-array block: read the lane-dense slab and pass it through.

    The only "work" the reference module does is read x; this mirrors that
    read in one step on a lane-dense (last dim multiple of 128) layout.
    """
    o_ref[...] = x_ref[...]


@jax.jit
def _touch_input_kernel(x):
    """Instrumentation-only Pallas call (NOT used by forward).

    Reshapes x to a lane-dense 2D slab wrapper-side, runs a single-block
    in-place identity (input_output_aliases), and reshapes back.
    """
    B, T, D = x.shape
    n = B * T * D
    if n % 128 == 0:
        slab_shape = (n // 128, 128)          # fully lane-dense, e.g. (4, 128)
    else:
        slab_shape = (B, T * D)               # fallback: widest available last dim
    x2 = x.reshape(slab_shape)

    y2 = pl.pallas_call(
        _passthrough_kernel,
        out_shape=jax.ShapeDtypeStruct(slab_shape, x.dtype),
        in_specs=[pl.BlockSpec(slab_shape, lambda: (0, 0))],
        out_specs=pl.BlockSpec(slab_shape, lambda: (0, 0)),
        input_output_aliases={0: 0},          # identity copy done in place
    )(x2)

    return y2.reshape(B, T, D)


def motion2traj_transformer_forward(x):
    """Pallas/JAX implementation of Motion2Traj_Transformer.forward.

    Args:
      x: jnp.ndarray of shape [B, T, dim]
    Returns:
      None (exactly like the PyTorch module).
    """
    B, T = x.shape[:2]
    del B, T
    # The per-timestep slice `x[:, :t]` in the reference is a pure read whose
    # result is discarded; there is no arithmetic, no parameter, no output.
    # TODO(synk): module defines no learnable parameters and returns None;
    # there is no computation to lower to a kernel on the forward path.
    return None


if __name__ == "__main__":
    key = jax.random.PRNGKey(0)
    B, T, DIM = 2, 8, 32
    x = jax.random.normal(key, (B, T, DIM), dtype=jnp.float32)

    # Forward pass: matches the PyTorch module contract (returns None, no work).
    out = motion2traj_transformer_forward(x)
    assert out is None, "forward must return None to match the PyTorch module"

    # Harness requirement: run one Pallas kernel on TPU and block on it.
    # (Device->host sync via array_equal is fine here, off the forward path.)
    y = _touch_input_kernel(x)
    jax.block_until_ready(y)
    assert bool(jnp.array_equal(y, x)), "passthrough kernel must preserve x"

    print("KERNEL_OK")
</pallas_src>

<mosaic_0001>
module attributes {stable_mosaic.version = 11 : i64} {
  func.func @_passthrough_kernel(%arg0: memref<4x128xf32, #tpu.memory_space<vmem>>, %arg1: memref<4x128xf32, #tpu.memory_space<vmem>>) attributes {dimension_semantics = [], scalar_prefetch = 0 : i64, scratch_operands = 0 : i64, tpu.core_type = #tpu.core_type<tc>} {
    %c0 = arith.constant 0 : index
    %c0_0 = arith.constant 0 : index
    %0 = vector.load %arg0[%c0, %c0_0] : memref<4x128xf32, #tpu.memory_space<vmem>>, vector<4x128xf32>
    %c0_1 = arith.constant 0 : index
    %c0_2 = arith.constant 0 : index
    %1 = vector.load %arg1[%c0_1, %c0_2] : memref<4x128xf32, #tpu.memory_space<vmem>>, vector<4x128xf32>
    tpu.vector_store %arg1[%c0_1, %c0_2], %0 {strides = array<i32>} : memref<4x128xf32, #tpu.memory_space<vmem>>, vector<4x128xf32>,
    return
  }
}

</mosaic_0001>

<bundles_post_ra>
// kernel: _touch_input_kernel.1
= control target key start
LH: loop header
LB: loop body
LE: loop exit
PB: predicated region body
PF: predicated region fallthrough
CT: control target
= control target key end

     0   :  { %s30_s0 = inlined_call_operand.vmem [shape: f32[4,128], index: 0, kind: input, shape index: {}, may-alias: {0,1}]   ;;  %s31_s1 = inlined_call_operand.vmem [shape: f32[4,128], index: 1, kind: output, shape index: {}, may-alias: {0,1}]  }
   0x1   :  { %v8_v0 = vld [vmem:[%s30_s0] sm:$0xf] }
   0x2   :  { %9 = vst [vmem:[%s31_s1] sm:$0xf] %v8_v0 }

</bundles_post_ra>
